<compile_context>
chip_gen: v5e
topology: v5e:2x2
jax: 0.10.0
libtpu: 0.0.40
codegen_flags: <defaults>
</compile_context>

<pallas_src>
import jax
import jax.numpy as jnp
from jax.experimental import pallas as pl
from jax.experimental.pallas import tpu as pltpu

STATE_SIZE = 54
HIDDEN = 256
ACTION_SIZE = 12
OUT_PAD = 128          # lane-dense padded output width (minimum unmasked vst width)

assert OUT_PAD <= HIDDEN, "b3 is sliced out of the packed (3, HIDDEN) bias array"


def dqn_kernel(x_ref, w1_ref, w2_ref, w3_ref, bias_ref, o_ref):
    # Hoisted bias loads (f32): one VMEM read each, reused below.
    b1 = bias_ref[0:1, :]            # (1, 256)
    b2 = bias_ref[1:2, :]            # (1, 256)
    b3 = bias_ref[2:3, 0:OUT_PAD]    # (1, 128) -- only first ACTION_SIZE lanes non-zero

    x = x_ref[...]                   # (TB, 54) bf16, cast in the wrapper (exact for int states)

    # fc1 + ReLU: bf16 operands into the MXU, f32 accumulation, f32 elementwise.
    h1 = jnp.dot(x, w1_ref[...], preferred_element_type=jnp.float32)
    h1 = jnp.maximum(h1 + b1, 0.0)

    # fc2 + ReLU
    h2 = jnp.dot(h1.astype(jnp.bfloat16), w2_ref[...],
                 preferred_element_type=jnp.float32)
    h2 = jnp.maximum(h2 + b2, 0.0)

    # fc3 (no activation); lane-dense (TB, 128) f32 slab, unmasked store.
    out = jnp.dot(h2.astype(jnp.bfloat16), w3_ref[...],
                  preferred_element_type=jnp.float32)
    o_ref[...] = (out + b3).astype(o_ref.dtype)


def _single_block_call(x_bf16, kp):
    """Whole problem in one VMEM block, no grid (small / remainder batches)."""
    B = x_bf16.shape[0]
    vmem = pl.BlockSpec(memory_space=pltpu.MemorySpace.VMEM)
    return pl.pallas_call(
        dqn_kernel,
        out_shape=jax.ShapeDtypeStruct((B, OUT_PAD), jnp.float32),
        in_specs=[vmem] * 5,
        out_specs=vmem,
    )(x_bf16, kp["w1"], kp["w2"], kp["w3"], kp["bias"])


def _gridded_call(x_bf16, kp, tile_b):
    """1-D batch grid; weights/biases use constant index_maps so they are
    fetched once and stay resident in VMEM across all grid steps."""
    B = x_bf16.shape[0]
    assert B % tile_b == 0 and tile_b % 8 == 0
    return pl.pallas_call(
        dqn_kernel,
        out_shape=jax.ShapeDtypeStruct((B, OUT_PAD), jnp.float32),
        grid_spec=pltpu.PrefetchScalarGridSpec(
            num_scalar_prefetch=0,
            grid=(B // tile_b,),
            in_specs=[
                pl.BlockSpec((tile_b, STATE_SIZE), lambda i: (i, 0)),
                pl.BlockSpec((STATE_SIZE, HIDDEN), lambda i: (0, 0)),
                pl.BlockSpec((HIDDEN, HIDDEN), lambda i: (0, 0)),
                pl.BlockSpec((HIDDEN, OUT_PAD), lambda i: (0, 0)),
                pl.BlockSpec((3, HIDDEN), lambda i: (0, 0)),
            ],
            out_specs=pl.BlockSpec((tile_b, OUT_PAD), lambda i: (i, 0)),
        ),
        compiler_params=pltpu.CompilerParams(
            dimension_semantics=("parallel",)),
    )(x_bf16, kp["w1"], kp["w2"], kp["w3"], kp["bias"])


def dqn_forward(x, kparams, *, tile_b=1024):
    """Forward pass.  x: [B, 54] float32 (cube facelet states, integers 0..5).

    tile_b: batch rows per grid step for the large-batch path.  Must be a
    multiple of 8; 1024 amortizes the fixed per-grid-step overhead (sweep
    512-2048 when tuning).  MXU geometry is irrelevant to this choice and
    VMEM use is a few MiB even at tile_b=2048 -- no per-generation override.
    """
    assert x.ndim == 2 and x.shape[1] == STATE_SIZE
    B = x.shape[0]

    # bf16 input halves the streaming x DMA; exact because cube states are
    # small integers.  TODO(synk): gate/remove this cast if x ever becomes
    # general float features (it would silently diverge from an f32 reference).
    x_bf16 = x.astype(jnp.bfloat16)

    if B < 2 * tile_b:
        # Tiny/medium batch: single VMEM block, no grid.
        # TODO(synk): the per-env-step (B~2) case is 100% weight-DMA/launch
        # bound (~220 KB of bf16 weights vs ~1 KB of activations); keep weights
        # resident across calls (P10 cross-pallas_call VMEM future) or batch
        # multiple envs per call to actually move inference latency.
        return _single_block_call(x_bf16, kparams)[:, :ACTION_SIZE]

    # Large batch: gridded, weight-resident path.  Keep the step count even so
    # v7x's two TensorCores get equal halves of the grid; any dropped tile's
    # rows join the remainder and go through the single-block path (this also
    # avoids the jnp.pad HBM round-trip entirely).
    n_main = B // tile_b
    if n_main % 2 == 1:
        n_main -= 1
    b_main = n_main * tile_b

    out = _gridded_call(x_bf16[:b_main], kparams, tile_b)[:, :ACTION_SIZE]
    if b_main < B:
        out_rem = _single_block_call(x_bf16[b_main:], kparams)[:, :ACTION_SIZE]
        out = jnp.concatenate([out, out_rem], axis=0)
    return out


def init_params(key):
    """Deterministic init mirroring torch.nn.Linear default (uniform +/- 1/sqrt(fan_in)).

    Weights are stored [in, out] (transposed w.r.t. torch), biases as [1, out], f32.
    """
    ks = jax.random.split(key, 6)

    def linear(kw, kb, fan_in, fan_out):
        bound = 1.0 / jnp.sqrt(float(fan_in))
        w = jax.random.uniform(kw, (fan_in, fan_out), jnp.float32, -bound, bound)
        b = jax.random.uniform(kb, (1, fan_out), jnp.float32, -bound, bound)
        return w, b

    w1, b1 = linear(ks[0], ks[1], STATE_SIZE, HIDDEN)
    w2, b2 = linear(ks[2], ks[3], HIDDEN, HIDDEN)
    w3, b3 = linear(ks[4], ks[5], HIDDEN, ACTION_SIZE)
    return {"w1": w1, "b1": b1, "w2": w2, "b2": b2, "w3": w3, "b3": b3}


def pack_params(params):
    """Repack f32 params into kernel layout: bf16 weights, lane-padded w3, and
    a single packed (3, 256) f32 bias array (b3 zero-padded)."""
    w3p = jnp.zeros((HIDDEN, OUT_PAD), jnp.float32)
    w3p = w3p.at[:, :ACTION_SIZE].set(params["w3"])

    bias = jnp.zeros((3, HIDDEN), jnp.float32)
    bias = bias.at[0, :].set(params["b1"][0])
    bias = bias.at[1, :].set(params["b2"][0])
    bias = bias.at[2, :ACTION_SIZE].set(params["b3"][0])

    # TODO(synk): optional int8 weight quant for v5e/v6e tiny-batch inference
    # (NOT portable to v7x, whose MXU has no int path).
    return {
        "w1": params["w1"].astype(jnp.bfloat16),
        "w2": params["w2"].astype(jnp.bfloat16),
        "w3": w3p.astype(jnp.bfloat16),
        "bias": bias,
    }


def dqn_reference(x, params):
    """Pure-JAX reference mirroring the kernel's bf16-operand / f32-accum math."""
    xb = x.astype(jnp.bfloat16)
    w1 = params["w1"].astype(jnp.bfloat16)
    w2 = params["w2"].astype(jnp.bfloat16)
    w3 = params["w3"].astype(jnp.bfloat16)
    h1 = jnp.dot(xb, w1, preferred_element_type=jnp.float32)
    h1 = jnp.maximum(h1 + params["b1"], 0.0)
    h2 = jnp.dot(h1.astype(jnp.bfloat16), w2, preferred_element_type=jnp.float32)
    h2 = jnp.maximum(h2 + params["b2"], 0.0)
    out = jnp.dot(h2.astype(jnp.bfloat16), w3, preferred_element_type=jnp.float32)
    return out + params["b3"]


if __name__ == "__main__":
    key = jax.random.PRNGKey(0)
    k_params, k_x1, k_x2 = jax.random.split(key, 3)

    params = init_params(k_params)
    kparams = pack_params(params)

    # --- tiny batch (per-env-step inference shape): single-block path ---
    batch = 2
    x_small = jax.random.randint(k_x1, (batch, STATE_SIZE), 0, 6).astype(jnp.float32)
    out_small = jax.block_until_ready(dqn_forward(x_small, kparams))
    ref_small = dqn_reference(x_small, params)
    assert out_small.shape == (batch, ACTION_SIZE), out_small.shape
    assert jnp.allclose(out_small, ref_small, atol=2e-3, rtol=2e-3), "small-batch mismatch"

    # --- larger batch (training shape): gridded, weight-resident path.
    # tile_b=128 here just to exercise the grid + even-step-count + remainder
    # logic at a small test size; the production default is tile_b=1024.
    big = 520
    x_big = jax.random.randint(k_x2, (big, STATE_SIZE), 0, 6).astype(jnp.float32)
    out_big = jax.block_until_ready(dqn_forward(x_big, kparams, tile_b=128))
    ref_big = dqn_reference(x_big, params)
    assert out_big.shape == (big, ACTION_SIZE), out_big.shape
    assert jnp.allclose(out_big, ref_big, atol=2e-3, rtol=2e-3), "large-batch mismatch"

    print("KERNEL_OK")
</pallas_src>

<mosaic_0001>
module attributes {stable_mosaic.version = 11 : i64} {
  func.func @dqn_kernel(%arg0: memref<2x54xbf16, #tpu.memory_space<vmem>>, %arg1: memref<54x256xbf16, #tpu.memory_space<vmem>>, %arg2: memref<256x256xbf16, #tpu.memory_space<vmem>>, %arg3: memref<256x128xbf16, #tpu.memory_space<vmem>>, %arg4: memref<3x256xf32, #tpu.memory_space<vmem>>, %arg5: memref<2x128xf32, #tpu.memory_space<vmem>>) attributes {dimension_semantics = [], scalar_prefetch = 0 : i64, scratch_operands = 0 : i64, tpu.core_type = #tpu.core_type<tc>} {
    %c0 = arith.constant 0 : index
    %c0_0 = arith.constant 0 : index
    %0 = vector.load %arg4[%c0, %c0_0] : memref<3x256xf32, #tpu.memory_space<vmem>>, vector<1x256xf32>
    %c1 = arith.constant 1 : index
    %c0_1 = arith.constant 0 : index
    %1 = vector.load %arg4[%c1, %c0_1] : memref<3x256xf32, #tpu.memory_space<vmem>>, vector<1x256xf32>
    %c2 = arith.constant 2 : index
    %c0_2 = arith.constant 0 : index
    %2 = vector.load %arg4[%c2, %c0_2] : memref<3x256xf32, #tpu.memory_space<vmem>>, vector<1x128xf32>
    %c0_3 = arith.constant 0 : index
    %c0_4 = arith.constant 0 : index
    %3 = vector.load %arg0[%c0_3, %c0_4] : memref<2x54xbf16, #tpu.memory_space<vmem>>, vector<2x54xbf16>
    %c0_5 = arith.constant 0 : index
    %c0_6 = arith.constant 0 : index
    %4 = vector.load %arg1[%c0_5, %c0_6] : memref<54x256xbf16, #tpu.memory_space<vmem>>, vector<54x256xbf16>
    %cst = arith.constant dense<0.000000e+00> : vector<2x256xf32>
    %5 = tpu.matmul %3, %4, %cst {dimension_numbers = #tpu.dot_dimension_numbers<[1], [0], [0], [1], [0, 0, 1, 1], [], []>} : vector<2x54xbf16>, vector<54x256xbf16>, vector<2x256xf32> -> vector<2x256xf32>
    %6 = vector.broadcast %0 : vector<1x256xf32> to vector<2x256xf32>
    %7 = arith.addf %5, %6 : vector<2x256xf32>
    %cst_7 = arith.constant 0.000000e+00 : f32
    %8 = vector.broadcast %cst_7 : f32 to vector<2x256xf32>
    %9 = arith.maximumf %7, %8 : vector<2x256xf32>
    %10 = arith.truncf %9 : vector<2x256xf32> to vector<2x256xbf16>
    %c0_8 = arith.constant 0 : index
    %c0_9 = arith.constant 0 : index
    %11 = vector.load %arg2[%c0_8, %c0_9] : memref<256x256xbf16, #tpu.memory_space<vmem>>, vector<256x256xbf16>
    %cst_10 = arith.constant dense<0.000000e+00> : vector<2x256xf32>
    %12 = tpu.matmul %10, %11, %cst_10 {dimension_numbers = #tpu.dot_dimension_numbers<[1], [0], [0], [1], [0, 0, 1, 1], [], []>} : vector<2x256xbf16>, vector<256x256xbf16>, vector<2x256xf32> -> vector<2x256xf32>
    %13 = vector.broadcast %1 : vector<1x256xf32> to vector<2x256xf32>
    %14 = arith.addf %12, %13 : vector<2x256xf32>
    %cst_11 = arith.constant 0.000000e+00 : f32
    %15 = vector.broadcast %cst_11 : f32 to vector<2x256xf32>
    %16 = arith.maximumf %14, %15 : vector<2x256xf32>
    %17 = arith.truncf %16 : vector<2x256xf32> to vector<2x256xbf16>
    %c0_12 = arith.constant 0 : index
    %c0_13 = arith.constant 0 : index
    %18 = vector.load %arg3[%c0_12, %c0_13] : memref<256x128xbf16, #tpu.memory_space<vmem>>, vector<256x128xbf16>
    %cst_14 = arith.constant dense<0.000000e+00> : vector<2x128xf32>
    %19 = tpu.matmul %17, %18, %cst_14 {dimension_numbers = #tpu.dot_dimension_numbers<[1], [0], [0], [1], [0, 0, 1, 1], [], []>} : vector<2x256xbf16>, vector<256x128xbf16>, vector<2x128xf32> -> vector<2x128xf32>
    %20 = vector.broadcast %2 : vector<1x128xf32> to vector<2x128xf32>
    %21 = arith.addf %19, %20 : vector<2x128xf32>
    %c0_15 = arith.constant 0 : index
    %c0_16 = arith.constant 0 : index
    %22 = vector.load %arg5[%c0_15, %c0_16] : memref<2x128xf32, #tpu.memory_space<vmem>>, vector<2x128xf32>
    tpu.vector_store %arg5[%c0_15, %c0_16], %21 {strides = array<i32>} : memref<2x128xf32, #tpu.memory_space<vmem>>, vector<2x128xf32>,
    return
  }
}

</mosaic_0001>

<bundles_post_ra>
// kernel: tpu_custom_call.1
= control target key start
LH: loop header
LB: loop body
LE: loop exit
PB: predicated region body
PF: predicated region fallthrough
CT: control target
= control target key end

     0   :  { %10 = vsyncpa [#allocation3], 0  ;;  %s1110_s0 = inlined_call_operand.hbm [shape: bf16[2,54], index: 0, kind: input, shape index: {}]   ;;  %s1111_s1 = inlined_call_operand.hbm [shape: bf16[54,256], index: 1, kind: input, shape index: {}]   ;;  %s1112_s2 = inlined_call_operand.hbm [shape: bf16[256,256], index: 2, kind: input, shape index: {}]   ;;  %s1113_s3 = inlined_call_operand.hbm [shape: bf16[256,128], index: 3, kind: input, shape index: {}]   ;;  %s1114_s4 = inlined_call_operand.hbm [shape: f32[3,256], index: 4, kind: input, shape index: {}]   ;;  %s1115_s5 = inlined_call_operand.hbm [shape: f32[2,128], index: 5, kind: output, shape index: {}]  }
   0x1   :  { %11 = vsyncpa [#allocation6], 0 }
   0x2   :  { %12 = vsyncpa [#allocation9], 0  ;;  %s29_s20 = sshll.u32 %s1111_s1, 4  ;;  %s30_s20 = int_to_ptr.hbm [resolvable:$true] %s29_s20 }
   0x3   :  { %13 = vsyncpa [#allocation4], 0  ;;  %s1052_s21 = smov [#allocation5]   ;;  %s55_s25 = sshll.u32 %s1113_s3, 4  ;;  %s56_s25 = int_to_ptr.hbm [resolvable:$true] %s55_s25 }
   0x4   :  { %s31_s22 = sshll.u32 %s1052_s21, 4  ;;  %s1053_s26 = smov 128   ;;  %s32_s22 = int_to_ptr.vmem [resolvable:$true] %s31_s22 }
   0x5   :  { %s1054_s27 = smov 8   ;;  %s1055_s28 = smov [#allocation8]  }
   0x6   :  { %37 = dma.hbm_to_vmem [thread:$0]  %s30_s20, 896, %s32_s22, [#allocation6], %s1053_s26, %s1053_s26, %s1054_s27  }
   0x7   :  { %s57_s29 = sshll.u32 %s1055_s28, 4  ;;  %s1056_s30 = smov 64   ;;  %s58_s29 = int_to_ptr.vmem [resolvable:$true] %s57_s29 }
   0x8   :  { %s1057_s6 = smov 4   ;;  %s19_s8 = sshll.u32 %s1110_s0, 4  ;;  %s20_s8 = int_to_ptr.hbm [resolvable:$true] %s19_s8 }
   0x9   :  { %63 = dma.hbm_to_vmem [thread:$0]  %s56_s25, 2048, %s58_s29, [#allocation9], %s1056_s30, %s1056_s30, %s1057_s6  }
   0xa   :  { %s1058_s9 = smov [#allocation2]   ;;  %s42_s12 = sshll.u32 %s1112_s2, 4  ;;  %s43_s12 = int_to_ptr.hbm [resolvable:$true] %s42_s12 }
   0xb   :  { %s21_s10 = sshll.u32 %s1058_s9, 4  ;;  %s1059_s13 = smov [#allocation7]   ;;  %s22_s10 = int_to_ptr.vmem [resolvable:$true] %s21_s10 }
   0xc   :  { %24 = dma.hbm_to_vmem [thread:$0]  %s20_s8, 16, %s22_s10, [#allocation3]  }
   0xd   :  { %s44_s14 = sshll.u32 %s1059_s13, 4  ;;  %s69_s17 = sshll.u32 %s1114_s4, 4  ;;  %s45_s14 = int_to_ptr.vmem [resolvable:$true] %s44_s14  ;;  %s70_s17 = int_to_ptr.hbm [resolvable:$true] %s69_s17 }
   0xe   :  { %50 = dma.hbm_to_vmem [thread:$0]  %s43_s12, 4096, %s45_s14, [#allocation6], %s1053_s26, %s1053_s26, %s1054_s27  }
   0xf   :  { %s1060_s0 = smov [#allocation10]  }
  0x10   :  { %s71_s18 = sshll.u32 %s1060_s0, 4  ;;  %s72_s18 = int_to_ptr.vmem [resolvable:$true] %s71_s18 }
  0x11   :  { %74 = dma.hbm_to_vmem [thread:$0]  %s70_s17, 128, %s72_s18, [#allocation9]  }
  0x12   :  { %1044 = dma.done.wait [#allocation3], 16  }
  0x13   :  { %1045 = vsyncadd [#allocation3], 4294967280 }
  0x14   :  { %1046 = dma.done.wait [#allocation6], 4992  }
  0x15   :  { %1047 = vsyncadd [#allocation6], 4294962304 }
  0x16   :  { %1048 = dma.done.wait [#allocation9], 2176  }
  0x17   :  { %1049 = vsyncadd [#allocation9], 4294965120  ;;  %v107_v0 = vld [vmem:[#allocation5 + $0x30] sm:$0x77]  ;;  %vm152_vm0 = vcmask 1042432   ;;  %vm148_vm1 = vcmask 441344  }
  0x18   :  { %v132_v1 = vunpack.c.l.b16 %v107_v0  ;;  %v133_v2 = vunpack.c.h.b16 %v107_v0  ;;  %v635_v3 = vld [vmem:[#allocation5 + $0x20] sm:$0xf]  ;;  %v840_v6 = vld [vmem:[#allocation5 + $0x24] sm:$0xf0]  ;;  %v839_v7 = vld [vmem:[#allocation5 + $0x24] sm:$0xf] }
  0x19   :  { %v637_v8 = vld [vmem:[#allocation5 + $0x28] sm:$0xf0]  ;;  %v701_v9 = vld [vmem:[#allocation7 + $0x70] sm:$0xf]  ;;  %v856_v12 = vld [vmem:[#allocation7 + $0x74] sm:$0xf0]  ;;  %v636_v14 = vor.u32 %v840_v6, %v635_v3 }
  0x1a   :  { %v140_v4 = vpack.c.b16 %v132_v1, %v132_v1  ;;  %v141_v5 = vpack.c.b16 %v133_v2, %v133_v2  ;;  %v765_v13 = vld [vmem:[#allocation7 + $0xf0] sm:$0xf]  ;;  %v640_v15 = vor.u32 %v839_v7, %v637_v8  ;;  %v627_v16 = vld [vmem:[#allocation5 + $0x10] sm:$0xf]  ;;  %v838_v17 = vld [vmem:[#allocation5 + $0x14] sm:$0xf0]  ;;  %v702_v18 = vor.u32 %v856_v12, %v701_v9 }
  0x1b   :  { %v872_v19 = vld [vmem:[#allocation7 + $0xf4] sm:$0xf0]  ;;  %v837_v20 = vld [vmem:[#allocation5 + $0x14] sm:$0xf]  ;;  %v629_v21 = vld [vmem:[#allocation5 + $0x18] sm:$0xf0]  ;;  %v628_v32 = vor.u32 %v838_v17, %v627_v16 }
  0x1c   :  { %v154_v10 = vsel %vm152_vm0, %v140_v4, 0  ;;  %v157_v11 = vsel %vm152_vm0, %v141_v5, 0  ;;  %v766_v22 = vor.u32 %v872_v19, %v765_v13  ;;  %v693_v23 = vld [vmem:[#allocation7 + $0x60] sm:$0xf]  ;;  %386 = vmatpush.bf16.msra.mxu2 %v702_v18  ;;  %v854_v24 = vld [vmem:[#allocation7 + $0x64] sm:$0xf0]  ;;  %v632_v33 = vor.u32 %v837_v20, %v629_v21 }
  0x1d   :  { %163 = vmatpush.bf16.msra.mxu0 %v154_v10  ;;  %176 = vmatpush.bf16.msra.mxu1 %v157_v11  ;;  %v757_v25 = vld [vmem:[#allocation7 + $0xe0] sm:$0xf]  ;;  %v870_v26 = vld [vmem:[#allocation7 + $0xe4] sm:$0xf0]  ;;  %v836_v28 = vld [vmem:[#allocation5 + $0x4] sm:$0xf0]  ;;  %v694_v30 = vor.u32 %v854_v24, %v693_v23 }
  0x1e   :  { %v619_v27 = vld [vmem:[#allocation5] sm:$0xf]  ;;  %v835_v29 = vld [vmem:[#allocation5 + $0x4] sm:$0xf]  ;;  %399 = vmatpush.bf16.msra.mxu3 %v766_v22  ;;  %v758_v31 = vor.u32 %v870_v26, %v757_v25  ;;  %v621_v34 = vld [vmem:[#allocation5 + $0x8] sm:$0xf0] }
  0x1f   :  { %v685_v35 = vld [vmem:[#allocation7 + $0x50] sm:$0xf]  ;;  %v852_v36 = vld [vmem:[#allocation7 + $0x54] sm:$0xf0]  ;;  %v855_v37 = vld [vmem:[#allocation7 + $0x74] sm:$0xf]  ;;  %v620_v47 = vor.u32 %v836_v28, %v619_v27  ;;  %v624_v48 = vor.u32 %v835_v29, %v621_v34 }
  0x20   :  { %v749_v38 = vld [vmem:[#allocation7 + $0xd0] sm:$0xf]  ;;  %v868_v39 = vld [vmem:[#allocation7 + $0xd4] sm:$0xf0]  ;;  %v703_v40 = vld [vmem:[#allocation7 + $0x78] sm:$0xf0]  ;;  %387 = vmatpush.bf16.msra.mxu2 %v694_v30  ;;  %v686_v43 = vor.u32 %v852_v36, %v685_v35 }
  0x21   :  { %164 = vmatpush.bf16.msra.mxu0 %v636_v14  ;;  %177 = vmatpush.bf16.msra.mxu1 %v640_v15  ;;  %v871_v41 = vld [vmem:[#allocation7 + $0xf4] sm:$0xf]  ;;  %v767_v42 = vld [vmem:[#allocation7 + $0xf8] sm:$0xf0]  ;;  %v750_v44 = vor.u32 %v868_v39, %v749_v38  ;;  %v677_v45 = vld [vmem:[#allocation7 + $0x40] sm:$0xf]  ;;  %v706_v49 = vor.u32 %v855_v37, %v703_v40 }
  0x22   :  { %400 = vmatpush.bf16.msra.mxu3 %v758_v31  ;;  %v850_v46 = vld [vmem:[#allocation7 + $0x44] sm:$0xf0]  ;;  %v770_v50 = vor.u32 %v871_v41, %v767_v42  ;;  %v853_v51 = vld [vmem:[#allocation7 + $0x64] sm:$0xf]  ;;  %v741_v52 = vld [vmem:[#allocation7 + $0xc0] sm:$0xf] }
  0x23   :  { %v866_v53 = vld [vmem:[#allocation7 + $0xc4] sm:$0xf0]  ;;  %v695_v54 = vld [vmem:[#allocation7 + $0x68] sm:$0xf0]  ;;  %v869_v55 = vld [vmem:[#allocation7 + $0xe4] sm:$0xf]  ;;  %v678_v57 = vor.u32 %v850_v46, %v677_v45 }
  0x24   :  { %v759_v56 = vld [vmem:[#allocation7 + $0xe8] sm:$0xf0]  ;;  %388 = vmatpush.bf16.msra.mxu2 %v686_v43  ;;  %v669_v58 = vld [vmem:[#allocation7 + $0x30] sm:$0xf]  ;;  %v848_v59 = vld [vmem:[#allocation7 + $0x34] sm:$0xf0]  ;;  %v742_v61 = vor.u32 %v866_v53, %v741_v52  ;;  %v698_v62 = vor.u32 %v853_v51, %v695_v54 }
  0x25   :  { %165 = vmatpush.bf16.msra.mxu0 %v628_v32  ;;  %178 = vmatpush.bf16.msra.mxu1 %v632_v33  ;;  %v100_v60 = vld [vmem:[#allocation2] sm:$0x1]  ;;  %v762_v63 = vor.u32 %v869_v55, %v759_v56  ;;  %v851_v0 = vld [vmem:[#allocation7 + $0x54] sm:$0xf]  ;;  %v733_v1 = vld [vmem:[#allocation7 + $0xb0] sm:$0xf]  ;;  %v670_v6 = vor.u32 %v848_v59, %v669_v58 }
  0x26   :  { %401 = vmatpush.bf16.msra.mxu3 %v750_v44  ;;  %v864_v2 = vld [vmem:[#allocation7 + $0xb4] sm:$0xf0]  ;;  %v687_v3 = vld [vmem:[#allocation7 + $0x58] sm:$0xf0]  ;;  %v867_v4 = vld [vmem:[#allocation7 + $0xd4] sm:$0xf] }
  0x27   :  { %v751_v5 = vld [vmem:[#allocation7 + $0xd8] sm:$0xf0]  ;;  %v661_v7 = vld [vmem:[#allocation7 + $0x20] sm:$0xf]  ;;  %v846_v8 = vld [vmem:[#allocation7 + $0x24] sm:$0xf0]  ;;  %v734_v9 = vor.u32 %v864_v2, %v733_v1  ;;  %v690_v10 = vor.u32 %v851_v0, %v687_v3 }
  0x28   :  { %389 = vmatpush.bf16.msra.mxu2 %v678_v57  ;;  %v754_v11 = vor.u32 %v867_v4, %v751_v5  ;;  %v849_v12 = vld [vmem:[#allocation7 + $0x44] sm:$0xf]  ;;  %v725_v13 = vld [vmem:[#allocation7 + $0xa0] sm:$0xf]  ;;  %v862_v14 = vld [vmem:[#allocation7 + $0xa4] sm:$0xf0]  ;;  %v662_v18 = vor.u32 %v846_v8, %v661_v7 }
  0x29   :  { %166 = vmatpush.bf16.msra.mxu0 %v620_v47  ;;  %179 = vmatpush.bf16.msra.mxu1 %v624_v48  ;;  %v679_v15 = vld [vmem:[#allocation7 + $0x48] sm:$0xf0]  ;;  %v865_v16 = vld [vmem:[#allocation7 + $0xc4] sm:$0xf]  ;;  %v726_v19 = vor.u32 %v862_v14, %v725_v13  ;;  %v847_v22 = vld [vmem:[#allocation7 + $0x34] sm:$0xf] }
  0x2a   :  { %402 = vmatpush.bf16.msra.mxu3 %v742_v61  ;;  %v743_v17 = vld [vmem:[#allocation7 + $0xc8] sm:$0xf0]  ;;  %v682_v20 = vor.u32 %v849_v12, %v679_v15  ;;  %v671_v23 = vld [vmem:[#allocation7 + $0x38] sm:$0xf0]  ;;  %v863_v24 = vld [vmem:[#allocation7 + $0xb4] sm:$0xf] }
  0x2b   :  { %v746_v21 = vor.u32 %v865_v16, %v743_v17  ;;  %v735_v25 = vld [vmem:[#allocation7 + $0xb8] sm:$0xf0]  ;;  %v674_v26 = vor.u32 %v847_v22, %v671_v23  ;;  %v845_v28 = vld [vmem:[#allocation7 + $0x24] sm:$0xf]  ;;  %v663_v29 = vld [vmem:[#allocation7 + $0x28] sm:$0xf0] }
  0x2c   :  { %641 = vmatmul.msk.bf16.vlgmr.msra.gmra.mxu0 %vm148_vm1, %v100_v60  ;;  %642 = vmatmul.msk.bf16.vlgmr.msra.gmra.mxu1 %vm148_vm1, %v100_v60  ;;  %v738_v27 = vor.u32 %v863_v24, %v735_v25  ;;  %v861_v30 = vld [vmem:[#allocation7 + $0xa4] sm:$0xf]  ;;  %v727_v31 = vld [vmem:[#allocation7 + $0xa8] sm:$0xf0]  ;;  %v666_v32 = vor.u32 %v845_v28, %v663_v29  ;;  %v653_v34 = vld [vmem:[#allocation7 + $0x10] sm:$0xf] }
  0x2d   :  { %412 = vmatpush.bf16.msrb.mxu0 %v706_v49  ;;  %425 = vmatpush.bf16.msrb.mxu1 %v770_v50  ;;  %v730_v33 = vor.u32 %v861_v30, %v727_v31  ;;  %v844_v35 = vld [vmem:[#allocation7 + $0x14] sm:$0xf0]  ;;  %v717_v36 = vld [vmem:[#allocation7 + $0x90] sm:$0xf]  ;;  %v843_v39 = vld [vmem:[#allocation7 + $0x14] sm:$0xf] }
  0x2e   :  { %390 = vmatpush.bf16.msra.mxu2 %v670_v6  ;;  %403 = vmatpush.bf16.msra.mxu3 %v734_v9  ;;  %v654_v37 = vor.u32 %v844_v35, %v653_v34  ;;  %v860_v38 = vld [vmem:[#allocation7 + $0x94] sm:$0xf0]  ;;  %v655_v40 = vld [vmem:[#allocation7 + $0x18] sm:$0xf0]  ;;  %v859_v43 = vld [vmem:[#allocation7 + $0x94] sm:$0xf] }
  0x2f   :  { %v718_v41 = vor.u32 %v860_v38, %v717_v36  ;;  %v658_v42 = vor.u32 %v843_v39, %v655_v40  ;;  %v719_v44 = vld [vmem:[#allocation7 + $0x98] sm:$0xf0]  ;;  %v645_v46 = vld [vmem:[#allocation7] sm:$0xf]  ;;  %v842_v47 = vld [vmem:[#allocation7 + $0x4] sm:$0xf0] }
  0x30   :  { %v722_v45 = vor.u32 %v859_v43, %v719_v44  ;;  %v709_v48 = vld [vmem:[#allocation7 + $0x80] sm:$0xf]  ;;  %v646_v49 = vor.u32 %v842_v47, %v645_v46  ;;  %v858_v50 = vld [vmem:[#allocation7 + $0x84] sm:$0xf0]  ;;  %v841_v51 = vld [vmem:[#allocation7 + $0x4] sm:$0xf] }
  0x31   :  { %413 = vmatpush.bf16.msrb.mxu0 %v698_v62  ;;  %426 = vmatpush.bf16.msrb.mxu1 %v762_v63  ;;  %v647_v52 = vld [vmem:[#allocation7 + $0x8] sm:$0xf0]  ;;  %v710_v53 = vor.u32 %v858_v50, %v709_v48  ;;  %v857_v55 = vld [vmem:[#allocation7 + $0x84] sm:$0xf]  ;;  %v888_v58 = vld [vmem:[#allocation8 + $0x78] sm:$0xff]  ;;  %s1061_s2 = smov [#allocation11]  }
  0x32   :  { %391 = vmatpush.bf16.msra.mxu2 %v662_v18  ;;  %404 = vmatpush.bf16.msra.mxu3 %v726_v19  ;;  %v650_v54 = vor.u32 %v841_v51, %v647_v52  ;;  %v711_v56 = vld [vmem:[#allocation7 + $0x88] sm:$0xf0]  ;;  %v880_v59 = vld [vmem:[#allocation8 + $0x38] sm:$0xff]  ;;  %v887_v60 = vld [vmem:[#allocation8 + $0x70] sm:$0xff]  ;;  %s603_s4 = sshll.u32 %s1061_s2, 4  ;;  %s605_s21 = sshll.u32 %s1115_s5, 4  ;;  %s604_s4 = int_to_ptr.vmem [resolvable:$true] %s603_s4  ;;  %s606_s21 = int_to_ptr.hbm [resolvable:$true] %s605_s21 }
  0x33   :  { %v714_v57 = vor.u32 %v857_v55, %v711_v56  ;;  %v879_v61 = vld [vmem:[#allocation8 + $0x30] sm:$0xff]  ;;  %v886_v62 = vld [vmem:[#allocation8 + $0x68] sm:$0xff]  ;;  %v885_v0 = vld [vmem:[#allocation8 + $0x60] sm:$0xff] }
  0x34   :  { %v878_v63 = vld [vmem:[#allocation8 + $0x28] sm:$0xff]  ;;  %v877_v1 = vld [vmem:[#allocation8 + $0x20] sm:$0xff]  ;;  %v884_v2 = vld [vmem:[#allocation8 + $0x58] sm:$0xff] }
  0x35   :  { %414 = vmatpush.bf16.msrb.mxu0 %v690_v10  ;;  %427 = vmatpush.bf16.msrb.mxu1 %v754_v11  ;;  %v96_v3 = vld [vmem:[#allocation10] ss:$4 sm:$0x3]  ;;  %v883_v4 = vld [vmem:[#allocation8 + $0x50] sm:$0xff]  ;;  %v876_v17 = vld [vmem:[#allocation8 + $0x18] sm:$0xff] }
  0x36   :  { %392 = vmatpush.bf16.msra.mxu2 %v654_v37  ;;  %405 = vmatpush.bf16.msra.mxu3 %v718_v41  ;;  %v109_v5 = vperm.slane %v96_v3, 0  ;;  %v110_v6 = vperm.slane %v96_v3, 1  ;;  %v882_v18 = vld [vmem:[#allocation8 + $0x48] sm:$0xff]  ;;  %v875_v19 = vld [vmem:[#allocation8 + $0x10] sm:$0xff]  ;;  %v873_v22 = vld [vmem:[#allocation8] sm:$0xff] }
  0x37   :  { %v98_v23 = vld [vmem:[#allocation10 + $0x1] ss:$4 sm:$0x3]  ;;  %v899_v43 = vld [vmem:[#allocation10 + $0x2] ss:$0 sm:$0xff] }
  0x38   :  { %v223_v24 = vperm.slane %v98_v23, 1  ;;  %v222_v28 = vperm.slane %v98_v23, 0 }
  0x39   :  { %415 = vmatpush.bf16.msrb.mxu0 %v682_v20  ;;  %428 = vmatpush.bf16.msrb.mxu1 %v746_v21  ;;  %v881_v20 = vld [vmem:[#allocation8 + $0x40] sm:$0xff]  ;;  %v874_v21 = vld [vmem:[#allocation8 + $0x8] sm:$0xff] }
  0x3a   :  { %393 = vmatpush.bf16.msra.mxu2 %v646_v49  ;;  %406 = vmatpush.bf16.msra.mxu3 %v710_v53 }
  0x3d   :  { %416 = vmatpush.bf16.msrb.mxu0 %v674_v26  ;;  %429 = vmatpush.bf16.msrb.mxu1 %v738_v27 }
  0x3e   :  { %584 = vmatpush.bf16.msrb.mxu3 %v888_v58  ;;  %571 = vmatpush.bf16.msrb.mxu2 %v880_v59 }
  0x41   :  { %417 = vmatpush.bf16.msrb.mxu0 %v666_v32  ;;  %430 = vmatpush.bf16.msrb.mxu1 %v730_v33 }
  0x42   :  { %585 = vmatpush.bf16.msrb.mxu3 %v887_v60  ;;  %572 = vmatpush.bf16.msrb.mxu2 %v879_v61 }
  0x45   :  { %418 = vmatpush.bf16.msrb.mxu0 %v658_v42  ;;  %431 = vmatpush.bf16.msrb.mxu1 %v722_v45 }
  0x46   :  { %586 = vmatpush.bf16.msrb.mxu3 %v886_v62  ;;  %573 = vmatpush.bf16.msrb.mxu2 %v878_v63 }
  0x49   :  { %419 = vmatpush.bf16.msrb.mxu0 %v650_v54  ;;  %432 = vmatpush.bf16.msrb.mxu1 %v714_v57 }
  0x4a   :  { %587 = vmatpush.bf16.msrb.mxu3 %v885_v0  ;;  %574 = vmatpush.bf16.msrb.mxu2 %v877_v1 }
  0x4e   :  { %588 = vmatpush.bf16.msrb.mxu3 %v884_v2  ;;  %575 = vmatpush.bf16.msrb.mxu2 %v876_v17 }
  0x52   :  { %589 = vmatpush.bf16.msrb.mxu3 %v883_v4  ;;  %576 = vmatpush.bf16.msrb.mxu2 %v875_v19 }
  0x56   :  { %590 = vmatpush.bf16.msrb.mxu3 %v882_v18  ;;  %577 = vmatpush.bf16.msrb.mxu2 %v874_v21 }
  0x5a   :  { %591 = vmatpush.bf16.msrb.mxu3 %v881_v20  ;;  %578 = vmatpush.bf16.msrb.mxu2 %v873_v22 }
  0xa9   :  { %v168_v7 = vpop.f32.mrf.mxu0  ;;  %v181_v8 = vpop.f32.mrf.mxu1 }
  0xaa   :  { %v169_v9 = vadd.f32 %v168_v7, %v109_v5  ;;  %v182_v10 = vadd.f32 %v181_v8, %v110_v6 }
  0xac   :  { %v185_v11 = vmax.f32 %v169_v9, 0.0  ;;  %v186_v12 = vmax.f32 %v182_v10, 0.0 }
  0xae   :  { %v187_v13 = vpack.c.bf16 %v185_v11, %v185_v11  ;;  %v188_v14 = vpack.c.bf16 %v186_v12, %v186_v12 }
  0xb0   :  { %394 = vmatmul.bf16.vlgmr.msra.gmra.mxu2 %v187_v13  ;;  %407 = vmatmul.bf16.vlgmr.msra.gmra.mxu3 %v188_v14 }
  0xb1   :  { %420 = vmatmul.bf16.vlgmr.msrb.gmra.mxu0 %v187_v13  ;;  %433 = vmatmul.bf16.vlgmr.msrb.gmra.mxu1 %v188_v14  ;;  %v170_v15 = vpop.f32.mrf.mxu0  ;;  %v183_v16 = vpop.f32.mrf.mxu1 }
 0x12e   :  { %v421_v25 = vpop.f32.mrf.mxu0  ;;  %v434_v26 = vpop.f32.mrf.mxu1 }
 0x12f   :  { %v422_v27 = vadd.f32 %v421_v25, %v223_v24 }
 0x131   :  { %v435_v29 = vadd.f32 %v434_v26, %v422_v27 }
 0x133   :  { %v439_v30 = vmax.f32 %v435_v29, 0.0  ;;  %v395_v31 = vpop.f32.mrf.mxu2  ;;  %v408_v32 = vpop.f32.mrf.mxu3 }
 0x134   :  { %v396_v33 = vadd.f32 %v395_v31, %v222_v28 }
 0x135   :  { %v441_v34 = vpack.c.bf16 %v439_v30, %v439_v30 }
 0x136   :  { %v409_v35 = vadd.f32 %v408_v32, %v396_v33  ;;  %v423_v36 = vpop.f32.mrf.mxu0  ;;  %v436_v37 = vpop.f32.mrf.mxu1 }
 0x137   :  { %592 = vmatmul.bf16.vlgmr.msrb.gmra.mxu3 %v441_v34 }
 0x138   :  { %v438_v38 = vmax.f32 %v409_v35, 0.0 }
 0x13a   :  { %v440_v39 = vpack.c.bf16 %v438_v38, %v438_v38 }
 0x13b   :  { %v397_v40 = vpop.f32.mrf.mxu2  ;;  %v410_v41 = vpop.f32.mrf.mxu3 }
 0x13c   :  { %579 = vmatmul.bf16.vlgmr.msrb.gmra.mxu2 %v440_v39 }
 0x1ba   :  { %v593_v42 = vpop.f32.mrf.mxu3 }
 0x1bf   :  { %v580_v44 = vpop.f32.mrf.mxu2 }
 0x1c0   :  { %v581_v45 = vadd.f32 %v899_v43, %v580_v44 }
 0x1c2   :  { %v594_v46 = vadd.f32 %v593_v42, %v581_v45  ;;  %v595_v47 = vpop.f32.mrf.mxu3 }
 0x1c4   :  { %597 = vst [vmem:[#allocation11] sm:$0x3] %v594_v46 }
 0x1c5   :  { %608 = dma.vmem_to_hbm [thread:$0]  %s604_s4, 32, %s606_s21, [#allocation4]  }
 0x1c7   :  { %v582_v48 = vpop.f32.mrf.mxu2 }
 0x1c8   :  { %1050 = dma.done.wait [#allocation4], 32  }
 0x1c9   :  { %1051 = vsyncadd [#allocation4], 4294967264 }
 0x1ca   :  { %613 = vsyncpa [#allocation3], 1 }
 0x1cb   :  { %614 = vsyncpa [#allocation6], 1 }
 0x1cc   :  { %615 = vsyncpa [#allocation9], 1 }
 0x1cd   :  { %616 = vsyncpa [#allocation4], 1 }

</bundles_post_ra>
